<compile_context>
chip_gen: v7x
topology: tpu7x:2x2x1
jax: 0.10.0
libtpu: 0.0.40
codegen_flags: <defaults>
</compile_context>

<pallas_src>
import functools

import jax
import jax.numpy as jnp
from jax.experimental import pallas as pl
from jax.experimental.pallas import tpu as pltpu


# ----------------------------- Pallas kernel --------------------------------

def _silu(x):
    return x * jax.nn.sigmoid(x)


def _pz_c_kernel(c_ref, w1_ref, b1_ref, wh_ref, bh_ref, eps_ref,
                 zp_ref, mu_ref, lv_ref):
    """Fused Pz_c forward for one row-tile.

    c_ref:  (rows, n_clusters)                          f32
    w1_ref: (n_clusters, p2*d)   b1_ref: (1, p2*d)      f32
    wh_ref: (p2*d, 2*p2*d) block-diag packed [Wmu|Wlv]  bf16
    bh_ref: (1, 2*p2*d)    packed [bmu tiled | blv tiled] f32
    eps_ref: (rows, p2*d)                               bf16
    zp_ref / mu_ref / lv_ref: (rows, p2*d)              f32
    """
    # Layer 1: h = SiLU(c @ W1 + b1), kept resident (never leaves VMEM/vregs).
    h = jnp.dot(c_ref[...], w1_ref[...], preferred_element_type=jnp.float32)
    h = _silu(h + b1_ref[...])

    # Both heads in one lane-dense matmul: (rows, p2*d) @ (p2*d, 2*p2*d).
    # bf16 operands + f32 accumulation: the block-diagonal packing wastes 8x
    # MXU FLOPs, which puts an f32 matmul near the critical path on v5e; bf16
    # keeps it well under the HBM roofline on all generations.
    hh = jnp.dot(h.astype(jnp.bfloat16), wh_ref[...],
                 preferred_element_type=jnp.float32)
    hh = _silu(hh + bh_ref[...])

    pd = mu_ref.shape[-1]          # p2*d (lane-aligned split: multiple of 128)
    mu = hh[:, :pd]
    lv = hh[:, pd:]

    # Reparameterization: z_prior = mu + exp(0.5*logvar) * eps
    zp = mu + jnp.exp(0.5 * lv) * eps_ref[...].astype(jnp.float32)

    mu_ref[...] = mu
    lv_ref[...] = lv
    zp_ref[...] = zp


# ------------------------------ param packing --------------------------------

def init_params(key, n_clusters, n_pts, latent_ndim):
    """torch.nn.Linear-default init: U(-1/sqrt(fan_in), 1/sqrt(fan_in))."""
    p2d = n_pts * 2 * latent_ndim
    ks = jax.random.split(key, 6)

    def lin(kw, kb, fan_in, fan_out):
        bound = 1.0 / jnp.sqrt(fan_in)
        w = jax.random.uniform(kw, (fan_in, fan_out), jnp.float32, -bound, bound)
        b = jax.random.uniform(kb, (1, fan_out), jnp.float32, -bound, bound)
        return w, b

    w1, b1 = lin(ks[0], ks[1], n_clusters, p2d)
    wmu, bmu = lin(ks[2], ks[3], latent_ndim, latent_ndim)
    wlv, blv = lin(ks[4], ks[5], latent_ndim, latent_ndim)
    return {"w1": w1, "b1": b1, "wmu": wmu, "bmu": bmu, "wlv": wlv, "blv": blv}


def pack_params(params, n_pts):
    """Host-side (one-time) packing of the per-point head weights into a
    block-diagonal lane-dense weight so the heads run in (B, p2*d) layout.
    The packed head weight is stored in bf16 (operand precision only; the
    matmul accumulates in f32)."""
    p2 = n_pts * 2
    wmu, wlv = params["wmu"], params["wlv"]
    d = wmu.shape[0]
    eye = jnp.eye(p2, dtype=wmu.dtype)
    # block-diag: element [(p*d+i), (q*d+j)] = eye[p,q] * W[i,j]
    wmu_bd = jnp.einsum("pq,ij->piqj", eye, wmu).reshape(p2 * d, p2 * d)
    wlv_bd = jnp.einsum("pq,ij->piqj", eye, wlv).reshape(p2 * d, p2 * d)
    wh = jnp.concatenate([wmu_bd, wlv_bd], axis=1).astype(jnp.bfloat16)
    bh = jnp.concatenate([jnp.tile(params["bmu"], (1, p2)),
                          jnp.tile(params["blv"], (1, p2))], axis=1)  # (1, 2*p2*d)
    return {"w1": params["w1"], "b1": params["b1"], "wh": wh, "bh": bh}


# --------------------------------- wrapper ------------------------------------

def _choose_block_rows(b):
    """Row-tile size: target 512 (amortizes ~0.35us/step, fits v5e's 16 MiB
    scoped-VMEM default at <6 MiB working set), always a multiple of 8, and
    guarantees >= 2 grid steps whenever possible so ("parallel",) shards the
    batch across v7x's two TensorCores."""
    if b <= 8:
        return b
    half = (b // 2) // 8 * 8
    if half == 0:
        return b
    return min(512, half)


@functools.partial(jax.jit, static_argnames=("n_pts", "latent_ndim"))
def pz_c_forward(c, packed, eps, *, n_pts, latent_ndim):
    """Fused Pallas implementation of Pz_c.forward.
    Returns (z_prior, mu_prior, logvar_prior), each (B, n_pts*2, latent_ndim)."""
    b, nc = c.shape
    p2 = n_pts * 2
    d = latent_ndim
    pd = p2 * d

    # eps is pure sampling noise -> carry it in bf16 to cut HBM traffic.
    # TODO(synk): eps could be generated in-kernel (pltpu.prng_random_bits +
    # Box-Muller) to drop this input entirely; kept as an argument for
    # determinism/testability vs torch.randn_like.
    eps_flat = eps.reshape(b, pd).astype(jnp.bfloat16)

    block_rows = _choose_block_rows(b)
    # cdiv grid: ragged last tile is handled by Pallas (masked stores); row
    # computations are independent so padded garbage rows never leak.
    grid = (pl.cdiv(b, block_rows),)

    out_row_spec = pl.BlockSpec((block_rows, pd), lambda i: (i, 0))
    eps_spec = pl.BlockSpec((block_rows, pd), lambda i: (i, 0))
    grid_spec = pltpu.PrefetchScalarGridSpec(
        num_scalar_prefetch=0,
        grid=grid,
        in_specs=[
            pl.BlockSpec((block_rows, nc), lambda i: (i, 0)),   # c tile
            pl.BlockSpec((nc, pd), lambda i: (0, 0)),           # W1 (resident)
            pl.BlockSpec((1, pd), lambda i: (0, 0)),            # b1
            pl.BlockSpec((pd, 2 * pd), lambda i: (0, 0)),       # packed head W (bf16)
            pl.BlockSpec((1, 2 * pd), lambda i: (0, 0)),        # packed head b
            eps_spec,                                           # eps tile (bf16)
        ],
        out_specs=[out_row_spec, out_row_spec, out_row_spec],
    )

    zp, mu, lv = pl.pallas_call(
        _pz_c_kernel,
        out_shape=(
            jax.ShapeDtypeStruct((b, pd), jnp.float32),
            jax.ShapeDtypeStruct((b, pd), jnp.float32),
            jax.ShapeDtypeStruct((b, pd), jnp.float32),
        ),
        grid_spec=grid_spec,
        compiler_params=pltpu.CompilerParams(
            dimension_semantics=("parallel",)),
    )(c, packed["w1"], packed["b1"], packed["wh"], packed["bh"], eps_flat)

    return (zp.reshape(b, p2, d), mu.reshape(b, p2, d), lv.reshape(b, p2, d))


# ------------------------------ pure-JAX reference ----------------------------

def _reference(c, params, eps, n_pts, latent_ndim):
    b = c.shape[0]
    h = _silu(c @ params["w1"] + params["b1"])
    z = h.reshape(b, n_pts * 2, latent_ndim)
    mu = _silu(z @ params["wmu"] + params["bmu"])
    lv = _silu(z @ params["wlv"] + params["blv"])
    zp = mu + jnp.exp(0.5 * lv) * eps
    return zp, mu, lv


if __name__ == "__main__":
    # Small config consistent with the module's forward.
    n_clusters = 8
    n_pts = 4          # -> n_pts * 2 = 8 points
    latent_ndim = 32   # -> p2*d = 256 lanes (lane-dense)

    key = jax.random.PRNGKey(0)
    k_par, k_c, k_eps = jax.random.split(key, 3)

    params = init_params(k_par, n_clusters, n_pts, latent_ndim)
    packed = pack_params(params, n_pts)

    def run_and_check(batch, kc, keps):
        # soft cluster assignment + reparameterization noise (randn_like equiv.)
        c = jax.nn.softmax(
            jax.random.normal(kc, (batch, n_clusters), jnp.float32), axis=-1)
        eps = jax.random.normal(keps, (batch, n_pts * 2, latent_ndim), jnp.float32)
        # Round the noise to bf16 once so kernel and reference see identical eps.
        eps_bf = eps.astype(jnp.bfloat16).astype(jnp.float32)

        zp, mu, lv = pz_c_forward(c, packed, eps_bf,
                                  n_pts=n_pts, latent_ndim=latent_ndim)
        jax.block_until_ready((zp, mu, lv))

        zp_ref, mu_ref, lv_ref = _reference(c, params, eps_bf, n_pts, latent_ndim)
        assert zp.shape == (batch, n_pts * 2, latent_ndim)
        assert jnp.allclose(mu, mu_ref, atol=1e-2, rtol=1e-2)
        assert jnp.allclose(lv, lv_ref, atol=1e-2, rtol=1e-2)
        assert jnp.allclose(zp, zp_ref, atol=1e-2, rtol=1e-2)

    # tiny batch: single full-array block
    run_and_check(2, k_c, k_eps)
    # non-multiple-of-tile batch: exercises the cdiv grid + ragged last tile
    k_c2, k_eps2 = jax.random.split(jax.random.PRNGKey(1))
    run_and_check(40, k_c2, k_eps2)

    print("KERNEL_OK")
</pallas_src>

<mosaic_0001>
module attributes {stable_mosaic.version = 11 : i64} {
  func.func @_pz_c_kernel(%arg0: i32, %arg1: memref<2x8xf32, #tpu.memory_space<vmem>>, %arg2: memref<8x256xf32, #tpu.memory_space<vmem>>, %arg3: memref<1x256xf32, #tpu.memory_space<vmem>>, %arg4: memref<256x512xbf16, #tpu.memory_space<vmem>>, %arg5: memref<1x512xf32, #tpu.memory_space<vmem>>, %arg6: memref<2x256xbf16, #tpu.memory_space<vmem>>, %arg7: memref<2x256xf32, #tpu.memory_space<vmem>>, %arg8: memref<2x256xf32, #tpu.memory_space<vmem>>, %arg9: memref<2x256xf32, #tpu.memory_space<vmem>>) attributes {dimension_semantics = [#tpu.dimension_semantics<parallel>], iteration_bounds = array<i64: 1>, scalar_prefetch = 0 : i64, scratch_operands = 0 : i64, tpu.core_type = #tpu.core_type<tc>, window_params = [{transform_indices = @transform_0, window_bounds = array<i64: 2, 8>}, {pipeline_mode = #tpu.pipeline_mode<synchronous>, transform_indices = @transform_1, window_bounds = array<i64: 8, 256>}, {pipeline_mode = #tpu.pipeline_mode<synchronous>, transform_indices = @transform_2, window_bounds = array<i64: 1, 256>}, {pipeline_mode = #tpu.pipeline_mode<synchronous>, transform_indices = @transform_3, window_bounds = array<i64: 256, 512>}, {pipeline_mode = #tpu.pipeline_mode<synchronous>, transform_indices = @transform_4, window_bounds = array<i64: 1, 512>}, {transform_indices = @transform_5, window_bounds = array<i64: 2, 256>}, {transform_indices = @transform_6, window_bounds = array<i64: 2, 256>}, {transform_indices = @transform_7, window_bounds = array<i64: 2, 256>}, {transform_indices = @transform_8, window_bounds = array<i64: 2, 256>}]} {
    %c0 = arith.constant 0 : index
    %c0_0 = arith.constant 0 : index
    %0 = vector.load %arg1[%c0, %c0_0] : memref<2x8xf32, #tpu.memory_space<vmem>>, vector<2x8xf32>
    %c0_1 = arith.constant 0 : index
    %c0_2 = arith.constant 0 : index
    %1 = vector.load %arg2[%c0_1, %c0_2] : memref<8x256xf32, #tpu.memory_space<vmem>>, vector<8x256xf32>
    %cst = arith.constant dense<0.000000e+00> : vector<2x256xf32>
    %2 = tpu.matmul %0, %1, %cst {dimension_numbers = #tpu.dot_dimension_numbers<[1], [0], [0], [1], [0, 0, 1, 1], [], []>} : vector<2x8xf32>, vector<8x256xf32>, vector<2x256xf32> -> vector<2x256xf32>
    %c0_3 = arith.constant 0 : index
    %c0_4 = arith.constant 0 : index
    %3 = vector.load %arg3[%c0_3, %c0_4] : memref<1x256xf32, #tpu.memory_space<vmem>>, vector<1x256xf32>
    %4 = vector.broadcast %3 : vector<1x256xf32> to vector<2x256xf32>
    %5 = arith.addf %2, %4 : vector<2x256xf32>
    %6 = arith.negf %5 : vector<2x256xf32>
    %7 = math.exp %6 : vector<2x256xf32>
    %cst_5 = arith.constant 1.000000e+00 : f32
    %8 = vector.broadcast %cst_5 : f32 to vector<2x256xf32>
    %9 = arith.addf %8, %7 : vector<2x256xf32>
    %10 = arith.divf %8, %9 : vector<2x256xf32>
    %11 = arith.mulf %5, %10 : vector<2x256xf32>
    %12 = arith.truncf %11 : vector<2x256xf32> to vector<2x256xbf16>
    %c0_6 = arith.constant 0 : index
    %c0_7 = arith.constant 0 : index
    %13 = vector.load %arg4[%c0_6, %c0_7] : memref<256x512xbf16, #tpu.memory_space<vmem>>, vector<256x512xbf16>
    %cst_8 = arith.constant dense<0.000000e+00> : vector<2x512xf32>
    %14 = tpu.matmul %12, %13, %cst_8 {dimension_numbers = #tpu.dot_dimension_numbers<[1], [0], [0], [1], [0, 0, 1, 1], [], []>} : vector<2x256xbf16>, vector<256x512xbf16>, vector<2x512xf32> -> vector<2x512xf32>
    %c0_9 = arith.constant 0 : index
    %c0_10 = arith.constant 0 : index
    %15 = vector.load %arg5[%c0_9, %c0_10] : memref<1x512xf32, #tpu.memory_space<vmem>>, vector<1x512xf32>
    %16 = vector.broadcast %15 : vector<1x512xf32> to vector<2x512xf32>
    %17 = arith.addf %14, %16 : vector<2x512xf32>
    %18 = arith.negf %17 : vector<2x512xf32>
    %19 = math.exp %18 : vector<2x512xf32>
    %cst_11 = arith.constant 1.000000e+00 : f32
    %20 = vector.broadcast %cst_11 : f32 to vector<2x512xf32>
    %21 = arith.addf %20, %19 : vector<2x512xf32>
    %22 = arith.divf %20, %21 : vector<2x512xf32>
    %23 = arith.mulf %17, %22 : vector<2x512xf32>
    %24 = vector.extract_strided_slice %23 {offsets = [0, 0], sizes = [2, 256], strides = [1, 1]} : vector<2x512xf32> to vector<2x256xf32>
    %25 = vector.extract_strided_slice %23 {offsets = [0, 256], sizes = [2, 256], strides = [1, 1]} : vector<2x512xf32> to vector<2x256xf32>
    %cst_12 = arith.constant 5.000000e-01 : f32
    %26 = vector.broadcast %cst_12 : f32 to vector<2x256xf32>
    %27 = arith.mulf %26, %25 : vector<2x256xf32>
    %28 = math.exp %27 : vector<2x256xf32>
    %c0_13 = arith.constant 0 : index
    %c0_14 = arith.constant 0 : index
    %29 = vector.load %arg6[%c0_13, %c0_14] : memref<2x256xbf16, #tpu.memory_space<vmem>>, vector<2x256xbf16>
    %30 = arith.extf %29 : vector<2x256xbf16> to vector<2x256xf32>
    %31 = arith.mulf %28, %30 : vector<2x256xf32>
    %32 = arith.addf %24, %31 : vector<2x256xf32>
    %c0_15 = arith.constant 0 : index
    %c0_16 = arith.constant 0 : index
    %33 = vector.load %arg8[%c0_15, %c0_16] : memref<2x256xf32, #tpu.memory_space<vmem>>, vector<2x256xf32>
    tpu.vector_store %arg8[%c0_15, %c0_16], %24 {strides = array<i32>} : memref<2x256xf32, #tpu.memory_space<vmem>>, vector<2x256xf32>,
    %c0_17 = arith.constant 0 : index
    %c0_18 = arith.constant 0 : index
    %34 = vector.load %arg9[%c0_17, %c0_18] : memref<2x256xf32, #tpu.memory_space<vmem>>, vector<2x256xf32>
    tpu.vector_store %arg9[%c0_17, %c0_18], %25 {strides = array<i32>} : memref<2x256xf32, #tpu.memory_space<vmem>>, vector<2x256xf32>,
    %c0_19 = arith.constant 0 : index
    %c0_20 = arith.constant 0 : index
    %35 = vector.load %arg7[%c0_19, %c0_20] : memref<2x256xf32, #tpu.memory_space<vmem>>, vector<2x256xf32>
    tpu.vector_store %arg7[%c0_19, %c0_20], %32 {strides = array<i32>} : memref<2x256xf32, #tpu.memory_space<vmem>>, vector<2x256xf32>,
    return
  }
  func.func @transform_0(%arg0: i32) -> (i32, i32) {
    %c0_i32 = arith.constant 0 : i32
    %c0_i32_0 = arith.constant 0 : i32
    return %arg0, %c0_i32 : i32, i32
  }
  func.func @transform_1(%arg0: i32) -> (i32, i32) {
    %c0_i32 = arith.constant 0 : i32
    %c0_i32_0 = arith.constant 0 : i32
    %c0_i32_1 = arith.constant 0 : i32
    return %c0_i32, %c0_i32_0 : i32, i32
  }
  func.func @transform_2(%arg0: i32) -> (i32, i32) {
    %c0_i32 = arith.constant 0 : i32
    %c0_i32_0 = arith.constant 0 : i32
    %c0_i32_1 = arith.constant 0 : i32
    return %c0_i32, %c0_i32_0 : i32, i32
  }
  func.func @transform_3(%arg0: i32) -> (i32, i32) {
    %c0_i32 = arith.constant 0 : i32
    %c0_i32_0 = arith.constant 0 : i32
    %c0_i32_1 = arith.constant 0 : i32
    return %c0_i32, %c0_i32_0 : i32, i32
  }
  func.func @transform_4(%arg0: i32) -> (i32, i32) {
    %c0_i32 = arith.constant 0 : i32
    %c0_i32_0 = arith.constant 0 : i32
    %c0_i32_1 = arith.constant 0 : i32
    return %c0_i32, %c0_i32_0 : i32, i32
  }
  func.func @transform_5(%arg0: i32) -> (i32, i32) {
    %c0_i32 = arith.constant 0 : i32
    %c0_i32_0 = arith.constant 0 : i32
    return %arg0, %c0_i32 : i32, i32
  }
  func.func @transform_6(%arg0: i32) -> (i32, i32) {
    %c0_i32 = arith.constant 0 : i32
    %c0_i32_0 = arith.constant 0 : i32
    return %arg0, %c0_i32 : i32, i32
  }
  func.func @transform_7(%arg0: i32) -> (i32, i32) {
    %c0_i32 = arith.constant 0 : i32
    %c0_i32_0 = arith.constant 0 : i32
    return %arg0, %c0_i32 : i32, i32
  }
  func.func @transform_8(%arg0: i32) -> (i32, i32) {
    %c0_i32 = arith.constant 0 : i32
    %c0_i32_0 = arith.constant 0 : i32
    return %arg0, %c0_i32 : i32, i32
  }
}

</mosaic_0001>

<bundles_post_ra>
// kernel: pz_c_forward.1
= control target key start
LH: loop header
LB: loop body
LE: loop exit
PB: predicated region body
PF: predicated region fallthrough
CT: control target
= control target key end

     0   :  { %14 = vsyncpa [#allocation3], 0  ;;  %s961_s27 = smov [#allocation2]   ;;  %s1057_s0 = inlined_call_operand.vmem [shape: f32[2,8], index: 0, kind: input, shape index: {}]   ;;  %s1058_s1 = inlined_call_operand.vmem [shape: f32[8,256], index: 1, kind: input, shape index: {}]   ;;  %s1059_s2 = inlined_call_operand.vmem [shape: f32[1,256], index: 2, kind: input, shape index: {}]   ;;  %s1060_s3 = inlined_call_operand.hbm [shape: bf16[256,512], index: 3, kind: input, shape index: {}]   ;;  %s1061_s4 = inlined_call_operand.vmem [shape: f32[1,512], index: 4, kind: input, shape index: {}]   ;;  %s1062_s5 = inlined_call_operand.vmem [shape: bf16[2,256], index: 5, kind: input, shape index: {}]   ;;  %s1063_s6 = inlined_call_operand.vmem [shape: f32[2,256], index: 6, kind: output, shape index: {0}]   ;;  %s1064_s7 = inlined_call_operand.vmem [shape: f32[2,256], index: 7, kind: output, shape index: {1}]   ;;  %s1065_s8 = inlined_call_operand.vmem [shape: f32[2,256], index: 8, kind: output, shape index: {2}]  }
   0x1   :  { %s26_s28 = sshll.u32 %s961_s27, 4  ;;  %s937_s9 = scalar_lea.hbm %s1060_s3, 8192  ;;  %s27_s28 = int_to_ptr.vmem [resolvable:$true] %s26_s28 }
   0x2   :  { %p938_p0 = scmp.ne.s32.totalorder %s1060_s3, %s937_s9  ;;  %p941_p1 = scmp.lt.u32.totalorder %s937_s9, %s1060_s3 }
   0x4   :  { %p943_p2 = pnand %p941_p1, %p938_p0 }
   0x6   :  { %946 = shalt.err (!%p943_p2)
}
   0x7   :  { %s947_s14 = scalar_lea.vmem %s27_s28, 8192  ;;  %p952_p4 = scmp.lt.s32.totalorder %s27_s28, %s27_s28 }
   0x8   :  { %p948_p3 = scmp.ne.s32.totalorder %s27_s28, %s947_s14  ;;  %p953_p5 = scmp.lt.s32.totalorder %s947_s14, %s947_s14 }
   0xa   :  { %p954_p6 = por %p953_p5, %p952_p4 }
   0xc   :  { %p955_p7 = pnand %p954_p6, %p948_p3 }
   0xe   :  { %958 = shalt.err (!%p955_p7)
}
   0xf   :  { %s962_s15 = smov 256   ;;  %s963_s16 = smov 16  }
  0x10   :  { %32 = dma.hbm_to_vmem [thread:$0]  %s1060_s3, 8192, %s27_s28, [#allocation3], %s962_s15, %s962_s15, %s963_s16  }
  0x11   :  { %959 = dma.done.wait [#allocation3], 8192  }
  0x12   :  { %960 = vsyncadd [#allocation3], 4294959104  ;;  %v964_v0 = vmov 0.0   ;;  %v42_v1 = vld [vmem:[%s1058_s1 + $0x8] sm:$0xff]  ;;  %v41_v2 = vld [vmem:[%s1058_s1] sm:$0xff]  ;;  %vm55_vm0 = vcmask 64512  }
  0x13   :  { %123 = vmatprep.mubr.f32.mxu0 %v964_v0  ;;  %v40_v3 = vld [vmem:[%s1057_s0] sm:$0x3]  ;;  %59 = vmatprep.subr.mxu0 %v42_v1  ;;  %v813_v4 = vld [vmem:[#allocation2 + $0x4] ss:$16 sps:$4 sm:$0xff]   ;;  %v815_v5 = vld [vmem:[#allocation2 + $0x8] ss:$16 sps:$4 sm:$0xff]  }
  0x14   :  { %60 = vmatpush1.msra.mxu0 %v41_v2  ;;  %552 = vmatprep.subr.bf16.mxu1 %v813_v4  ;;  %v817_v6 = vld [vmem:[#allocation2 + $0xc] ss:$16 sps:$4 sm:$0xff]   ;;  %v818_v7 = vld [vmem:[#allocation2] ss:$16 sps:$4 sm:$0xff]   ;;  %v819_v8 = vld [vmem:[#allocation2 + $0x24] ss:$16 sps:$4 sm:$0xff]   ;;  %v45_v4 = vlaneseq }
  0x15   :  { %734 = vmatmul.mubr.msk.f32.vlgmr.msra.gmra.mrb[0].mxu0 %vm55_vm0, %v40_v3  ;;  %593 = vmatprep.subr.bf16.mxu0 %v817_v6  ;;  %v821_v9 = vld [vmem:[#allocation2 + $0x28] ss:$16 sps:$4 sm:$0xff]   ;;  %v823_v10 = vld [vmem:[#allocation2 + $0x2c] ss:$16 sps:$4 sm:$0xff]   ;;  %v824_v11 = vld [vmem:[#allocation2 + $0x20] ss:$16 sps:$4 sm:$0xff]  }
  0x16   :  { %553 = vmatpush1.bf16.msra.mxu1 %v818_v7  ;;  %594 = vmatpush1.bf16.msra.mxu0 %v815_v5  ;;  %v825_v12 = vld [vmem:[#allocation2 + $0x44] ss:$16 sps:$4 sm:$0xff]   ;;  %v827_v13 = vld [vmem:[#allocation2 + $0x48] ss:$16 sps:$4 sm:$0xff]   ;;  %v829_v14 = vld [vmem:[#allocation2 + $0x4c] ss:$16 sps:$4 sm:$0xff]  }
  0x17   :  { %554 = vmatprep.subr.bf16.mxu1 %v819_v8  ;;  %595 = vmatprep.subr.bf16.mxu0 %v823_v10  ;;  %v830_v15 = vld [vmem:[#allocation2 + $0x40] ss:$16 sps:$4 sm:$0xff]   ;;  %v831_v16 = vld [vmem:[#allocation2 + $0x64] ss:$16 sps:$4 sm:$0xff]   ;;  %v835_v17 = vld [vmem:[#allocation2 + $0x6c] ss:$16 sps:$4 sm:$0xff]  }
  0x18   :  { %v833_v18 = vld [vmem:[#allocation2 + $0x68] ss:$16 sps:$4 sm:$0xff]   ;;  %v836_v19 = vld [vmem:[#allocation2 + $0x60] ss:$16 sps:$4 sm:$0xff]   ;;  %v837_v20 = vld [vmem:[#allocation2 + $0x84] ss:$16 sps:$4 sm:$0xff]  }
  0x19   :  { %v841_v21 = vld [vmem:[#allocation2 + $0x8c] ss:$16 sps:$4 sm:$0xff]   ;;  %v839_v22 = vld [vmem:[#allocation2 + $0x88] ss:$16 sps:$4 sm:$0xff]   ;;  %v842_v23 = vld [vmem:[#allocation2 + $0x80] ss:$16 sps:$4 sm:$0xff]  }
  0x1a   :  { %555 = vmatpush1.bf16.msra.mxu1 %v824_v11  ;;  %596 = vmatpush1.bf16.msra.mxu0 %v821_v9  ;;  %v843_v24 = vld [vmem:[#allocation2 + $0xa4] ss:$16 sps:$4 sm:$0xff]   ;;  %v847_v25 = vld [vmem:[#allocation2 + $0xac] ss:$16 sps:$4 sm:$0xff]   ;;  %v845_v26 = vld [vmem:[#allocation2 + $0xa8] ss:$16 sps:$4 sm:$0xff]  }
  0x1b   :  { %556 = vmatprep.subr.bf16.mxu1 %v825_v12  ;;  %597 = vmatprep.subr.bf16.mxu0 %v829_v14  ;;  %v848_v27 = vld [vmem:[#allocation2 + $0xa0] ss:$16 sps:$4 sm:$0xff]   ;;  %v849_v28 = vld [vmem:[#allocation2 + $0xc4] ss:$16 sps:$4 sm:$0xff]   ;;  %v853_v29 = vld [vmem:[#allocation2 + $0xcc] ss:$16 sps:$4 sm:$0xff]  }
  0x1c   :  { %v854_v30 = vld [vmem:[#allocation2 + $0xc0] ss:$16 sps:$4 sm:$0xff]   ;;  %v851_v31 = vld [vmem:[#allocation2 + $0xc8] ss:$16 sps:$4 sm:$0xff]   ;;  %v855_v32 = vld [vmem:[#allocation2 + $0xe4] ss:$16 sps:$4 sm:$0xff]  }
  0x1d   :  { %v859_v33 = vld [vmem:[#allocation2 + $0xec] ss:$16 sps:$4 sm:$0xff]   ;;  %v857_v34 = vld [vmem:[#allocation2 + $0xe8] ss:$16 sps:$4 sm:$0xff]   ;;  %v860_v35 = vld [vmem:[#allocation2 + $0xe0] ss:$16 sps:$4 sm:$0xff]  }
  0x1e   :  { %557 = vmatpush1.bf16.msra.mxu1 %v830_v15  ;;  %598 = vmatpush1.bf16.msra.mxu0 %v827_v13  ;;  %v861_v36 = vld [vmem:[#allocation2 + $0x104] ss:$16 sps:$4 sm:$0xff]   ;;  %v865_v37 = vld [vmem:[#allocation2 + $0x10c] ss:$16 sps:$4 sm:$0xff]   ;;  %v863_v38 = vld [vmem:[#allocation2 + $0x108] ss:$16 sps:$4 sm:$0xff]  }
  0x1f   :  { %558 = vmatprep.subr.bf16.mxu1 %v831_v16  ;;  %599 = vmatprep.subr.bf16.mxu0 %v835_v17  ;;  %v866_v39 = vld [vmem:[#allocation2 + $0x100] ss:$16 sps:$4 sm:$0xff]   ;;  %v867_v40 = vld [vmem:[#allocation2 + $0x124] ss:$16 sps:$4 sm:$0xff]   ;;  %v871_v41 = vld [vmem:[#allocation2 + $0x12c] ss:$16 sps:$4 sm:$0xff]  }
  0x20   :  { %v869_v42 = vld [vmem:[#allocation2 + $0x128] ss:$16 sps:$4 sm:$0xff]   ;;  %v872_v43 = vld [vmem:[#allocation2 + $0x120] ss:$16 sps:$4 sm:$0xff]   ;;  %v873_v44 = vld [vmem:[#allocation2 + $0x144] ss:$16 sps:$4 sm:$0xff]  }
  0x21   :  { %v877_v45 = vld [vmem:[#allocation2 + $0x14c] ss:$16 sps:$4 sm:$0xff]   ;;  %v875_v46 = vld [vmem:[#allocation2 + $0x148] ss:$16 sps:$4 sm:$0xff]   ;;  %v878_v47 = vld [vmem:[#allocation2 + $0x140] ss:$16 sps:$4 sm:$0xff]  }
  0x22   :  { %559 = vmatpush1.bf16.msra.mxu1 %v836_v19  ;;  %600 = vmatpush1.bf16.msra.mxu0 %v833_v18  ;;  %v879_v48 = vld [vmem:[#allocation2 + $0x164] ss:$16 sps:$4 sm:$0xff]   ;;  %v883_v49 = vld [vmem:[#allocation2 + $0x16c] ss:$16 sps:$4 sm:$0xff]   ;;  %v881_v50 = vld [vmem:[#allocation2 + $0x168] ss:$16 sps:$4 sm:$0xff]  }
  0x23   :  { %560 = vmatprep.subr.bf16.mxu1 %v837_v20  ;;  %601 = vmatprep.subr.bf16.mxu0 %v841_v21  ;;  %v884_v51 = vld [vmem:[#allocation2 + $0x160] ss:$16 sps:$4 sm:$0xff]   ;;  %v885_v52 = vld [vmem:[#allocation2 + $0x184] ss:$16 sps:$4 sm:$0xff]   ;;  %v889_v53 = vld [vmem:[#allocation2 + $0x18c] ss:$16 sps:$4 sm:$0xff]  }
  0x24   :  { %v887_v54 = vld [vmem:[#allocation2 + $0x188] ss:$16 sps:$4 sm:$0xff]   ;;  %v890_v55 = vld [vmem:[#allocation2 + $0x180] ss:$16 sps:$4 sm:$0xff]   ;;  %v891_v56 = vld [vmem:[#allocation2 + $0x1a4] ss:$16 sps:$4 sm:$0xff]  }
  0x25   :  { %v895_v57 = vld [vmem:[#allocation2 + $0x1ac] ss:$16 sps:$4 sm:$0xff]   ;;  %v893_v58 = vld [vmem:[#allocation2 + $0x1a8] ss:$16 sps:$4 sm:$0xff]   ;;  %v896_v59 = vld [vmem:[#allocation2 + $0x1a0] ss:$16 sps:$4 sm:$0xff]  }
  0x26   :  { %561 = vmatpush1.bf16.msra.mxu1 %v842_v23  ;;  %602 = vmatpush1.bf16.msra.mxu0 %v839_v22  ;;  %v897_v60 = vld [vmem:[#allocation2 + $0x1c4] ss:$16 sps:$4 sm:$0xff]   ;;  %v901_v61 = vld [vmem:[#allocation2 + $0x1cc] ss:$16 sps:$4 sm:$0xff]   ;;  %v899_v62 = vld [vmem:[#allocation2 + $0x1c8] ss:$16 sps:$4 sm:$0xff]  }
  0x27   :  { %562 = vmatprep.subr.bf16.mxu1 %v843_v24  ;;  %603 = vmatprep.subr.bf16.mxu0 %v847_v25  ;;  %v902_v63 = vld [vmem:[#allocation2 + $0x1c0] ss:$16 sps:$4 sm:$0xff]   ;;  %v903_v0 = vld [vmem:[#allocation2 + $0x1e4] ss:$16 sps:$4 sm:$0xff]   ;;  %v907_v1 = vld [vmem:[#allocation2 + $0x1ec] ss:$16 sps:$4 sm:$0xff]  }
  0x28   :  { %v905_v2 = vld [vmem:[#allocation2 + $0x1e8] ss:$16 sps:$4 sm:$0xff]   ;;  %v908_v3 = vld [vmem:[#allocation2 + $0x1e0] ss:$16 sps:$4 sm:$0xff]   ;;  %v1032_v5 = vshrl.u32 %v45_v4, 7 }
  0x29   :  { %v43_v7 = vld [vmem:[%s1059_s2] sm:$0x3] }
  0x2a   :  { %563 = vmatpush1.bf16.msra.mxu1 %v848_v27  ;;  %604 = vmatpush1.bf16.msra.mxu0 %v845_v26  ;;  %v47_v6 = vsub.s32 0, %v1032_v5  ;;  %v51_v8 = vsub.s32 1, %v1032_v5  ;;  %v222_v27 = vsub.s32 2, %v1032_v5 }
  0x2b   :  { %564 = vmatprep.subr.bf16.mxu1 %v849_v28  ;;  %605 = vmatprep.subr.bf16.mxu0 %v853_v29  ;;  %v210_v28 = vld [vmem:[%s1061_s4] sm:$0xf]  ;;  %v226_v29 = vsub.s32 3, %v1032_v5 }
  0x2c   :  { %v48_v9 = vrot.slane %v43_v7, %v47_v6  ;;  %v52_v10 = vrot.slane %v43_v7, %v51_v8 }
  0x2e   :  { %565 = vmatpush1.bf16.msra.mxu1 %v854_v30  ;;  %606 = vmatpush1.bf16.msra.mxu0 %v851_v31  ;;  %v215_v30 = vrot.slane %v210_v28, %v47_v6  ;;  %v223_v31 = vrot.slane %v210_v28, %v222_v27 }
  0x2f   :  { %566 = vmatprep.subr.bf16.mxu1 %v855_v32  ;;  %607 = vmatprep.subr.bf16.mxu0 %v859_v33  ;;  %v219_v32 = vrot.slane %v210_v28, %v51_v8  ;;  %v227_v33 = vrot.slane %v210_v28, %v226_v29 }
  0x32   :  { %608 = vmatpush1.bf16.msra.mxu0 %v857_v34  ;;  %567 = vmatpush1.bf16.msra.mxu1 %v860_v35 }
  0x33   :  { %568 = vmatprep.subr.bf16.mxu1 %v861_v36  ;;  %609 = vmatprep.subr.bf16.mxu0 %v865_v37 }
  0x36   :  { %569 = vmatpush1.bf16.msra.mxu1 %v866_v39  ;;  %610 = vmatpush1.bf16.msra.mxu0 %v863_v38 }
  0x37   :  { %570 = vmatprep.subr.bf16.mxu1 %v867_v40  ;;  %611 = vmatprep.subr.bf16.mxu0 %v871_v41 }
  0x3a   :  { %571 = vmatpush1.bf16.msra.mxu1 %v872_v43  ;;  %612 = vmatpush1.bf16.msra.mxu0 %v869_v42 }
  0x3b   :  { %572 = vmatprep.subr.bf16.mxu1 %v873_v44  ;;  %613 = vmatprep.subr.bf16.mxu0 %v877_v45 }
  0x3e   :  { %573 = vmatpush1.bf16.msra.mxu1 %v878_v47  ;;  %614 = vmatpush1.bf16.msra.mxu0 %v875_v46 }
  0x3f   :  { %574 = vmatprep.subr.bf16.mxu1 %v879_v48  ;;  %615 = vmatprep.subr.bf16.mxu0 %v883_v49 }
  0x42   :  { %575 = vmatpush1.bf16.msra.mxu1 %v884_v51  ;;  %616 = vmatpush1.bf16.msra.mxu0 %v881_v50 }
  0x43   :  { %576 = vmatprep.subr.bf16.mxu1 %v885_v52  ;;  %617 = vmatprep.subr.bf16.mxu0 %v889_v53 }
  0x46   :  { %577 = vmatpush1.bf16.msra.mxu1 %v890_v55  ;;  %618 = vmatpush1.bf16.msra.mxu0 %v887_v54 }
  0x47   :  { %578 = vmatprep.subr.bf16.mxu1 %v891_v56  ;;  %619 = vmatprep.subr.bf16.mxu0 %v895_v57 }
  0x4a   :  { %579 = vmatpush1.bf16.msra.mxu1 %v896_v59  ;;  %620 = vmatpush1.bf16.msra.mxu0 %v893_v58 }
  0x4b   :  { %580 = vmatprep.subr.bf16.mxu1 %v897_v60  ;;  %621 = vmatprep.subr.bf16.mxu0 %v901_v61  ;;  %v965_v61 = vmov 1983009808  }
  0x4e   :  { %581 = vmatpush1.bf16.msra.mxu1 %v902_v63  ;;  %622 = vmatpush1.bf16.msra.mxu0 %v899_v62  ;;  %v672_v62 = vunpack.c.l.s4 %v965_v61 }
  0x4f   :  { %582 = vmatprep.subr.bf16.mxu1 %v903_v0  ;;  %623 = vmatprep.subr.bf16.mxu0 %v907_v1 }
  0x50   :  { %v673_v6 = vunpack.c.0.s8 %v672_v62 }
  0x52   :  { %583 = vmatpush1.bf16.msra.mxu1 %v908_v3  ;;  %624 = vmatpush1.bf16.msra.mxu0 %v905_v2 }
  0xe8   :  { %v125_v11 = vpop.f32.mrb[0].mxu0 }
  0xe9   :  { %v126_v12 = vadd.f32 %v125_v11, %v48_v9  ;;  %v127_v13 = vpop.f32.mrb[1].mxu0  ;;  %v668_v9 = vld [vmem:[%s1062_s5] sm:$0x3] }
  0xea   :  { %v128_v14 = vadd.f32 %v127_v13, %v52_v10  ;;  %v669_v13 = vunpack.c.l.bf16 %v668_v9 }
  0xeb   :  { %v735_v15 = vmul.f32 -1.442695, %v126_v12 }
  0xec   :  { %v736_v16 = vmul.f32 -1.442695, %v128_v14 }
  0xed   :  { %909 = vpow2.f32 %v735_v15 }
  0xee   :  { %911 = vpow2.f32 %v736_v16 }
  0xf7   :  { %v910_v17 = vpop.eup %909 }
  0xf8   :  { %v912_v18 = vpop.eup %911  ;;  %v136_v19 = vadd.f32 1.0, %v910_v17 }
  0xf9   :  { %v137_v20 = vadd.f32 1.0, %v912_v18 }
  0xfa   :  { %913 = vrcp.f32 %v136_v19 }
  0xfb   :  { %915 = vrcp.f32 %v137_v20 }
 0x104   :  { %v914_v21 = vpop.eup %913 }
 0x105   :  { %v916_v22 = vpop.eup %915  ;;  %v142_v23 = vmul.f32 %v914_v21, %v126_v12 }
 0x106   :  { %v143_v24 = vmul.f32 %v916_v22, %v128_v14  ;;  %v676_v14 = vsub.s32 %v673_v6, %v1032_v5 }
 0x107   :  { %v144_v26 = vpack.c.bf16 %v142_v23, %v142_v23 }
 0x108   :  { %v145_v25 = vpack.c.bf16 %v143_v24, %v143_v24  ;;  %v677_v15 = vrot.slane %v669_v13, %v676_v14 }
 0x10a   :  { %584 = vmatprep.mubr.bf16.mxu1 %v145_v25  ;;  %625 = vmatprep.mubr.bf16.mxu0 %v145_v25  ;;  %v678_v16 = vcombine.high %v677_v15, %v677_v15 }
 0x10b   :  { %585 = vmatmul.mubr.bf16.vlgmr.msra.gmra.mrb[0].mxu1 %v144_v26  ;;  %626 = vmatmul.mubr.bf16.vlgmr.msra.gmra.mrb[4].mxu0 %v144_v26 }
 0x1de   :  { %v586_v34 = vpop.f32.mrb[0].mxu1  ;;  %v627_v35 = vpop.f32.mrb[4].mxu0 }
 0x1df   :  { %v587_v36 = vadd.f32 %v586_v34, %v215_v30  ;;  %v628_v37 = vadd.f32 %v627_v35, %v223_v31  ;;  %v588_v38 = vpop.f32.mrb[1].mxu1  ;;  %v629_v39 = vpop.f32.mrb[5].mxu0 }
 0x1e0   :  { %v589_v40 = vadd.f32 %v588_v38, %v219_v32  ;;  %v630_v41 = vadd.f32 %v629_v39, %v227_v33  ;;  %v590_v42 = vpop.f32.mrb[2].mxu1  ;;  %v631_v43 = vpop.f32.mrb[6].mxu0 }
 0x1e1   :  { %v801_v44 = vmul.f32 -1.442695, %v587_v36  ;;  %v803_v45 = vmul.f32 -1.442695, %v628_v37  ;;  %v591_v46 = vpop.f32.mrb[3].mxu1  ;;  %v632_v47 = vpop.f32.mrb[7].mxu0 }
 0x1e2   :  { %v802_v48 = vmul.f32 -1.442695, %v589_v40  ;;  %v804_v49 = vmul.f32 -1.442695, %v630_v41 }
 0x1e3   :  { %917 = vpow2.f32 %v801_v44 }
 0x1e4   :  { %919 = vpow2.f32 %v803_v45 }
 0x1e5   :  { %921 = vpow2.f32 %v802_v48 }
 0x1e6   :  { %923 = vpow2.f32 %v804_v49 }
 0x1ed   :  { %v918_v50 = vpop.eup %917 }
 0x1ee   :  { %v920_v51 = vpop.eup %919  ;;  %v646_v52 = vadd.f32 1.0, %v918_v50 }
 0x1ef   :  { %v922_v53 = vpop.eup %921  ;;  %v648_v54 = vadd.f32 1.0, %v920_v51 }
 0x1f0   :  { %v924_v55 = vpop.eup %923  ;;  %925 = vrcp.f32 %v646_v52  ;;  %v647_v56 = vadd.f32 1.0, %v922_v53 }
 0x1f1   :  { %927 = vrcp.f32 %v648_v54  ;;  %v649_v57 = vadd.f32 1.0, %v924_v55 }
 0x1f2   :  { %929 = vrcp.f32 %v647_v56 }
 0x1f3   :  { %931 = vrcp.f32 %v649_v57 }
 0x1fa   :  { %v926_v58 = vpop.eup %925 }
 0x1fb   :  { %v928_v59 = vpop.eup %927  ;;  %v658_v60 = vmul.f32 %v926_v58, %v587_v36 }
 0x1fc   :  { %v930_v63 = vpop.eup %929  ;;  %v660_v0 = vmul.f32 %v928_v59, %v628_v37 }
 0x1fd   :  { %v932_v1 = vpop.eup %931  ;;  %v659_v2 = vmul.f32 %v930_v63, %v589_v40 }
 0x1fe   :  { %v662_v3 = vmul.f32 0.5, %v660_v0  ;;  %v661_v4 = vmul.f32 %v932_v1, %v630_v41 }
 0x1ff   :  { %v687_v7 = vcombine.low %v658_v60, %v659_v2 }
 0x200   :  { %v664_v8 = vmul.f32 1.442695, %v662_v3  ;;  %v663_v10 = vmul.f32 0.5, %v661_v4  ;;  %v699_v11 = vcombine.low %v660_v0, %v661_v4 }
 0x201   :  { %805 = vst.sshfl [vmem:[%s1064_s7] sm:$0x33 pattern:$0x76325410] %v687_v7 }
 0x202   :  { %933 = vpow2.f32 %v664_v8  ;;  %v666_v12 = vmul.f32 1.442695, %v663_v10  ;;  %806 = vst.sshfl [vmem:[%s1065_s8] sm:$0x33 pattern:$0x76325410] %v699_v11 }
 0x204   :  { %935 = vpow2.f32 %v666_v12 }
 0x20c   :  { %v934_v17 = vpop.eup %933 }
 0x20d   :  { %v681_v18 = vmul.f32 %v934_v17, %v677_v15 }
 0x20e   :  { %v936_v19 = vpop.eup %935 }
 0x20f   :  { %v683_v20 = vadd.f32 %v681_v18, %v658_v60  ;;  %v682_v21 = vmul.f32 %v936_v19, %v678_v16 }
 0x211   :  { %v684_v22 = vadd.f32 %v682_v21, %v659_v2 }
 0x213   :  { %v711_v23 = vcombine.low %v683_v20, %v684_v22 }
 0x215   :  { %807 = vst.sshfl [vmem:[%s1063_s6] sm:$0x33 pattern:$0x76325410] %v711_v23 }
 0x216   :  { %733 = vsyncpa [#allocation3], 1 }

</bundles_post_ra>
